<compile_context>
chip_gen: v7x
topology: tpu7x:2x2x1
jax: 0.10.0
libtpu: 0.0.40
codegen_flags: <defaults>
</compile_context>

<pallas_src>
import math
import functools
import jax
import jax.numpy as jnp
from jax.experimental import pallas as pl
from jax.experimental.pallas import tpu as pltpu


# ---------------------------------------------------------------------------
# helpers
# ---------------------------------------------------------------------------
def _tile_and_pad(dim, pref, granularity):
    """Pick a block size (preferring `pref`) and the padded array extent.

    Tries pref, pref/2, pref/4 as exact divisors (respecting the lane/sublane
    granularity); otherwise pads `dim` up to a multiple of `pref`.  Small dims
    become a single full-extent block (always legal).
    """
    if dim <= pref:
        return dim, dim
    for t in (pref, pref // 2, pref // 4):
        if t % granularity == 0 and dim % t == 0:
            return t, dim
    padded = -(-dim // pref) * pref
    return pref, padded


@functools.lru_cache(maxsize=None)
def _vmem_limit():
    """Generation-aware scoped-VMEM budget with headroom for double-buffering."""
    try:
        cap = getattr(pltpu.get_tpu_info(), "vmem_capacity_bytes", None)
        if cap:
            return int(cap) * 3 // 4            # ~96 MiB v5e/v6e, ~48 MiB v7x
    except Exception:
        pass
    return 48 * 1024 * 1024                     # safe everywhere (v7x = 64 MiB)


# ---------------------------------------------------------------------------
# Tiled matmul kernel (per-tile bf16 casts, f32 accumulation on the MXU)
# ---------------------------------------------------------------------------
def _matmul_kernel(x_ref, w_ref, o_ref, acc_ref):
    @pl.when(pl.program_id(2) == 0)
    def _():
        acc_ref[...] = jnp.zeros_like(acc_ref)

    # casts are per-tile (VPU) -- no wrapper-side full-tensor cast passes.
    acc_ref[...] += jnp.dot(x_ref[...].astype(jnp.bfloat16),
                            w_ref[...].astype(jnp.bfloat16),
                            preferred_element_type=jnp.float32)

    @pl.when(pl.program_id(2) == pl.num_programs(2) - 1)
    def _():
        o_ref[...] = acc_ref[...].astype(o_ref.dtype)


def matmul_bf16(x, w, *, tm=512, tn=256, tk=512, out_dtype=jnp.float32):
    """x: (M, K) @ w: (K, N) -> (M, N); bf16 MXU inputs, f32 accumulation."""
    M, K = x.shape
    K2, N = w.shape
    assert K == K2
    tm, Mp = _tile_and_pad(M, tm, 8)
    tn, Np = _tile_and_pad(N, tn, 128)
    tk, Kp = _tile_and_pad(K, tk, 128)
    if (Mp, Kp) != (M, K):
        x = jnp.pad(x, ((0, Mp - M), (0, Kp - K)))
    if (Kp, Np) != (K, N):
        w = jnp.pad(w, ((0, Kp - K), (0, Np - N)))

    out = pl.pallas_call(
        _matmul_kernel,
        out_shape=jax.ShapeDtypeStruct((Mp, Np), out_dtype),
        grid_spec=pltpu.PrefetchScalarGridSpec(
            num_scalar_prefetch=0,
            grid=(Mp // tm, Np // tn, Kp // tk),
            in_specs=[pl.BlockSpec((tm, tk), lambda i, j, k: (i, k)),
                      pl.BlockSpec((tk, tn), lambda i, j, k: (k, j))],
            out_specs=pl.BlockSpec((tm, tn), lambda i, j, k: (i, j)),
            scratch_shapes=[pltpu.VMEM((tm, tn), jnp.float32)]),
        compiler_params=pltpu.CompilerParams(
            dimension_semantics=("parallel", "parallel", "arbitrary"),
            vmem_limit_bytes=_vmem_limit()),
    )(x, w)
    if (Mp, Np) != (M, N):
        out = out[:M, :N]
    return out


# ---------------------------------------------------------------------------
# RoPE pre-pass: rotate q (and fold in 1/sqrt(D)) and k ONCE per token,
# so the O(S^2) flash loop does no rotation at all.
# ---------------------------------------------------------------------------
def _rope_kernel(q_ref, k_ref, cos_ref, sin_ref, qo_ref, ko_ref,
                 *, num_heads, head_dim, q_scale):
    H, D = num_heads, head_dim
    half = D // 2
    cos = cos_ref[...]          # (ts, D) f32
    sin = sin_ref[...]

    # TODO(synk): per-head rotate_half loop; a strided lane swizzle (pltpu.roll)
    # could vectorize this across heads, but this kernel is a single O(S*hidden)
    # pass so it is not on the hot path.
    def rope_heads(src_ref, scl):
        pieces = []
        for h in range(H):
            x = src_ref[0, :, h * D:(h + 1) * D].astype(jnp.float32)
            rot = jnp.concatenate([-x[:, half:], x[:, :half]], axis=-1)
            y = x * cos + rot * sin
            if scl is not None:
                y = y * scl
            pieces.append(y)
        return jnp.concatenate(pieces, axis=-1)     # single lane-dense store

    qo_ref[0] = rope_heads(q_ref, q_scale).astype(qo_ref.dtype)
    ko_ref[0] = rope_heads(k_ref, None).astype(ko_ref.dtype)


def rope_qk(qkv, cos, sin, *, num_heads, seq_tile, out_dtype=jnp.bfloat16):
    """qkv: (B, S, 3*hidden) packed (S multiple of seq_tile); returns rotated
    (q * 1/sqrt(D), k) each of shape (B, S, hidden) in bf16."""
    B, S, three_h = qkv.shape
    hidden = three_h // 3
    D = hidden // num_heads
    kernel = functools.partial(_rope_kernel, num_heads=num_heads, head_dim=D,
                               q_scale=1.0 / math.sqrt(D))
    q_spec = pl.BlockSpec((1, seq_tile, hidden), lambda b, si: (b, si, 0))
    k_spec = pl.BlockSpec((1, seq_tile, hidden), lambda b, si: (b, si, 1))
    cs_spec = pl.BlockSpec((seq_tile, D), lambda b, si: (si, 0))
    out_spec = pl.BlockSpec((1, seq_tile, hidden), lambda b, si: (b, si, 0))
    return pl.pallas_call(
        kernel,
        out_shape=(jax.ShapeDtypeStruct((B, S, hidden), out_dtype),
                   jax.ShapeDtypeStruct((B, S, hidden), out_dtype)),
        grid_spec=pltpu.PrefetchScalarGridSpec(
            num_scalar_prefetch=0,
            grid=(B, S // seq_tile),
            in_specs=[q_spec, k_spec, cs_spec, cs_spec],
            out_specs=[out_spec, out_spec]),
        compiler_params=pltpu.CompilerParams(
            dimension_semantics=("parallel", "parallel"),
            vmem_limit_bytes=_vmem_limit()),
    )(qkv, qkv, cos, sin)


# ---------------------------------------------------------------------------
# Flash-style causal attention, vectorized across heads.
#   inputs are already RoPE'd (q pre-scaled); kv axis is innermost/"arbitrary".
# ---------------------------------------------------------------------------
def _flash_kernel(q_ref, k_ref, v_ref, bias_ref, o_ref,
                  q3_ref, m_ref, l_ref, acc_ref, *, num_heads, head_dim):
    H, D = num_heads, head_dim
    qi = pl.program_id(1)
    ki = pl.program_id(2)
    nk = pl.num_programs(2)

    @pl.when(ki == 0)
    def _init():
        m_ref[...] = jnp.full(m_ref.shape, -1e30, jnp.float32)
        l_ref[...] = jnp.zeros(l_ref.shape, jnp.float32)
        acc_ref[...] = jnp.zeros(acc_ref.shape, jnp.float32)
        # gather q heads once per q block -> (H, tq, D) bf16
        q3_ref[...] = jnp.stack(
            [q_ref[0, :, h * D:(h + 1) * D] for h in range(H)], axis=0)

    # Blocks strictly above the diagonal are skipped (and their K/V DMAs are
    # suppressed by the clamped index maps in the wrapper).
    @pl.when(ki <= qi)
    def _compute():
        k3 = jnp.stack([k_ref[0, :, h * D:(h + 1) * D] for h in range(H)], axis=0)
        v3 = jnp.stack([v_ref[0, :, h * D:(h + 1) * D] for h in range(H)], axis=0)
        q3 = q3_ref[...]                                              # (H,tq,D)

        # one batched QK matmul for all heads (MXU), f32 scores
        s = jax.lax.dot_general(q3, k3, (((2,), (2,)), ((0,), (0,))),
                                preferred_element_type=jnp.float32)   # (H,tq,tkv)
        # causal bias: all-zero block off-diagonal, lower-triangular on-diagonal
        # (selected by the BlockSpec index map; no in-kernel iota/compare).
        s = s + bias_ref[0]

        m_prev = m_ref[...]
        m_new = jnp.maximum(m_prev, jnp.max(s, axis=-1, keepdims=True))
        alpha = jnp.exp(m_prev - m_new)
        p = jnp.exp(s - m_new)
        l_ref[...] = alpha * l_ref[...] + jnp.sum(p, axis=-1, keepdims=True)
        pv = jax.lax.dot_general(p.astype(jnp.bfloat16), v3,
                                 (((2,), (1,)), ((0,), (0,))),
                                 preferred_element_type=jnp.float32)  # (H,tq,D)
        acc_ref[...] = alpha * acc_ref[...] + pv                      # MRB-friendly
        m_ref[...] = m_new

    @pl.when(ki == nk - 1)
    def _finalize():
        out = acc_ref[...] * pl.reciprocal(l_ref[...], approx=True)   # (H,tq,D)
        # single lane-dense (tq, hidden) store
        o_ref[0] = jnp.concatenate([out[h] for h in range(H)],
                                   axis=-1).astype(o_ref.dtype)


def flash_causal_attention(q_rot, k_rot, qkv, *, num_heads, seq_tile,
                           out_dtype=jnp.bfloat16):
    """q_rot/k_rot: (B, S, hidden) bf16 (RoPE'd, q pre-scaled); qkv holds v in
    its last hidden columns.  Returns (B, S, hidden) bf16."""
    B, S, hidden = q_rot.shape
    D = hidden // num_heads
    tq = seq_tile                         # tq == tkv (keeps the bias trick exact)
    nq = S // tq

    tri = jnp.tril(jnp.ones((tq, tq), dtype=bool))
    bias = jnp.stack([jnp.zeros((tq, tq), jnp.float32),
                      jnp.where(tri, 0.0, -1e30).astype(jnp.float32)])

    kernel = functools.partial(_flash_kernel, num_heads=num_heads, head_dim=D)

    q_spec = pl.BlockSpec((1, tq, hidden), lambda b, qi, ki: (b, qi, 0))
    # clamp the kv block index so causally-skipped iterations re-use the
    # resident block (no wasted K/V DMA).
    k_spec = pl.BlockSpec((1, tq, hidden),
                          lambda b, qi, ki: (b, jnp.minimum(ki, qi), 0))
    v_spec = pl.BlockSpec((1, tq, hidden),
                          lambda b, qi, ki: (b, jnp.minimum(ki, qi), 2))
    bias_spec = pl.BlockSpec((1, tq, tq),
                             lambda b, qi, ki: (jnp.where(qi == ki, 1, 0), 0, 0))
    o_spec = pl.BlockSpec((1, tq, hidden), lambda b, qi, ki: (b, qi, 0))

    return pl.pallas_call(
        kernel,
        out_shape=jax.ShapeDtypeStruct((B, S, hidden), out_dtype),
        grid_spec=pltpu.PrefetchScalarGridSpec(
            num_scalar_prefetch=0,
            grid=(B, nq, nq),                       # kv innermost ("arbitrary")
            in_specs=[q_spec, k_spec, v_spec, bias_spec],
            out_specs=o_spec,
            scratch_shapes=[pltpu.VMEM((num_heads, tq, D), jnp.bfloat16),  # q heads
                            pltpu.VMEM((num_heads, tq, 1), jnp.float32),   # m
                            pltpu.VMEM((num_heads, tq, 1), jnp.float32),   # l
                            pltpu.VMEM((num_heads, tq, D), jnp.float32)]), # acc
        compiler_params=pltpu.CompilerParams(
            dimension_semantics=("parallel", "parallel", "arbitrary"),
            vmem_limit_bytes=_vmem_limit()),
    )(q_rot, k_rot, qkv, bias)


# ---------------------------------------------------------------------------
# Full module forward (mirrors Attention.forward with masks=None, flash=True)
# ---------------------------------------------------------------------------
def make_rotary_cache(head_dim, max_pos, base=10000.0):
    inv_freq = 1.0 / (base ** (jnp.arange(0, head_dim, 2, dtype=jnp.float32) / head_dim))
    t = jnp.arange(max_pos, dtype=jnp.float32)
    freqs = jnp.einsum("i,j->ij", t, inv_freq)
    emb = jnp.concatenate([freqs, freqs], axis=-1)       # (max_pos, head_dim)
    return jnp.cos(emb), jnp.sin(emb)


def prepare_attention_params(params):
    """One-time prep: fused+transposed bf16 weights (not rebuilt per call)."""
    w_qkv = jnp.concatenate([params["q_proj"].T, params["k_proj"].T,
                             params["v_proj"].T], axis=1).astype(jnp.bfloat16)
    return {"w_qkv": w_qkv,                               # (hidden, 3*hidden)
            "w_o": params["o_proj"].T.astype(jnp.bfloat16),
            "cos_cached": params["cos_cached"],
            "sin_cached": params["sin_cached"]}


def attention_forward(hidden_states, prep, num_heads):
    """hidden_states: (B, S, hidden) float32."""
    B, S, hidden = hidden_states.shape

    # 1) fused QKV projection; output stays bf16 between kernels.
    # TODO(synk): RoPE could be fused into this matmul's finalize epilogue to
    # save one more HBM round trip of q/k.
    x2d = hidden_states.reshape(B * S, hidden)
    qkv = matmul_bf16(x2d, prep["w_qkv"], out_dtype=jnp.bfloat16)
    qkv = qkv.reshape(B, S, 3 * hidden)

    # 2) pad S to the flash tile (no-op at aligned sizes; padded keys are hidden
    #    by the causal mask, padded query rows are sliced off below).
    tq, S_pad = _tile_and_pad(S, 128, 8)
    cos = prep["cos_cached"][:S]
    sin = prep["sin_cached"][:S]
    if S_pad != S:
        qkv = jnp.pad(qkv, ((0, 0), (0, S_pad - S), (0, 0)))
        cos = jnp.pad(cos, ((0, S_pad - S), (0, 0)))
        sin = jnp.pad(sin, ((0, S_pad - S), (0, 0)))

    # 3) RoPE once per token (position_ids = arange(S))
    q_rot, k_rot = rope_qk(qkv, cos, sin, num_heads=num_heads, seq_tile=tq)

    # 4) causal flash attention (bf16 in / bf16 out, lane-dense hidden output)
    attn = flash_causal_attention(q_rot, k_rot, qkv,
                                  num_heads=num_heads, seq_tile=tq)
    attn = attn[:, :S, :]

    # 5) output projection back to f32
    out = matmul_bf16(attn.reshape(B * S, hidden), prep["w_o"],
                      out_dtype=jnp.float32)
    return out.reshape(B, S, hidden)


# ---------------------------------------------------------------------------
# Pure-JAX f32 reference (sanity check)
# ---------------------------------------------------------------------------
def attention_reference(hidden_states, params, num_heads):
    B, S, hidden = hidden_states.shape
    head_dim = hidden // num_heads
    q = hidden_states @ params["q_proj"].T
    k = hidden_states @ params["k_proj"].T
    v = hidden_states @ params["v_proj"].T

    def split_heads(t):
        return t.reshape(B, S, num_heads, head_dim).transpose(0, 2, 1, 3)

    q, k, v = split_heads(q), split_heads(k), split_heads(v)
    cos = params["cos_cached"][:S][None, None]
    sin = params["sin_cached"][:S][None, None]

    def rot_half(x):
        h = x.shape[-1] // 2
        return jnp.concatenate([-x[..., h:], x[..., :h]], axis=-1)

    q = q * cos + rot_half(q) * sin
    k = k * cos + rot_half(k) * sin

    scores = jnp.einsum("bhqd,bhkd->bhqk", q, k) / math.sqrt(head_dim)
    mask = jnp.tril(jnp.ones((S, S), dtype=bool))
    scores = jnp.where(mask, scores, -jnp.inf)
    p = jax.nn.softmax(scores, axis=-1)
    out = jnp.einsum("bhqk,bhkd->bhqd", p, v)
    out = out.transpose(0, 2, 1, 3).reshape(B, S, hidden)
    return out @ params["o_proj"].T


# ---------------------------------------------------------------------------
if __name__ == "__main__":
    # Small config: hidden=128, heads=4 (head_dim=32), seq=16, batch=2
    batch, seq_len = 2, 16
    hidden_size, num_heads = 128, 4
    max_position_embeddings = 64

    key = jax.random.PRNGKey(0)
    kx, kq, kk, kv, ko = jax.random.split(key, 5)

    wscale = 1.0 / math.sqrt(hidden_size)
    params = {
        "q_proj": jax.random.uniform(kq, (hidden_size, hidden_size), jnp.float32, -wscale, wscale),
        "k_proj": jax.random.uniform(kk, (hidden_size, hidden_size), jnp.float32, -wscale, wscale),
        "v_proj": jax.random.uniform(kv, (hidden_size, hidden_size), jnp.float32, -wscale, wscale),
        "o_proj": jax.random.uniform(ko, (hidden_size, hidden_size), jnp.float32, -wscale, wscale),
    }
    cos_cached, sin_cached = make_rotary_cache(hidden_size // num_heads,
                                               max_position_embeddings)
    params["cos_cached"] = cos_cached
    params["sin_cached"] = sin_cached

    hidden_states = jax.random.normal(kx, (batch, seq_len, hidden_size), jnp.float32)

    prep = prepare_attention_params(params)      # one-time weight fusion/cast
    out = attention_forward(hidden_states, prep, num_heads)
    out = jax.block_until_ready(out)

    ref = attention_reference(hidden_states, params, num_heads)
    assert out.shape == (batch, seq_len, hidden_size)
    # bf16 activations/weights on the MXU -> loosened tolerance vs f32 reference
    assert jnp.allclose(out, ref, atol=2e-2, rtol=2e-2), "mismatch vs reference"

    print("KERNEL_OK")
</pallas_src>

<mosaic_0001>
module attributes {stable_mosaic.version = 11 : i64} {
  func.func @_matmul_kernel(%arg0: i32, %arg1: i32, %arg2: i32, %arg3: memref<32x128xf32, #tpu.memory_space<vmem>>, %arg4: memref<128x128xbf16, #tpu.memory_space<vmem>>, %arg5: memref<32x128xbf16, #tpu.memory_space<vmem>>, %arg6: memref<32x128xf32, #tpu.memory_space<vmem>>) attributes {dimension_semantics = [#tpu.dimension_semantics<parallel>, #tpu.dimension_semantics<parallel>, #tpu.dimension_semantics<arbitrary>], iteration_bounds = array<i64: 1, 3, 1>, scalar_prefetch = 0 : i64, scratch_operands = 1 : i64, tpu.core_type = #tpu.core_type<tc>, window_params = [{transform_indices = @transform_0, window_bounds = array<i64: 32, 128>}, {transform_indices = @transform_1, window_bounds = array<i64: 128, 128>}, {transform_indices = @transform_2, window_bounds = array<i64: 32, 128>}]} {
    %c0_i32 = arith.constant 0 : i32
    %0 = arith.cmpi eq, %arg2, %c0_i32 : i32
    %1 = arith.extui %0 : i1 to i32
    %c0_i32_0 = arith.constant 0 : i32
    %2 = arith.cmpi ne, %1, %c0_i32_0 : i32
    scf.if %2 {
      %cst_10 = arith.constant 0.000000e+00 : f32
      %13 = vector.broadcast %cst_10 : f32 to vector<32x128xf32>
      %c0_11 = arith.constant 0 : index
      %c0_12 = arith.constant 0 : index
      %14 = vector.load %arg6[%c0_11, %c0_12] : memref<32x128xf32, #tpu.memory_space<vmem>>, vector<32x128xf32>
      tpu.vector_store %arg6[%c0_11, %c0_12], %13 {strides = array<i32>} : memref<32x128xf32, #tpu.memory_space<vmem>>, vector<32x128xf32>,
    } else {
    }
    %c0 = arith.constant 0 : index
    %c0_1 = arith.constant 0 : index
    %3 = vector.load %arg6[%c0, %c0_1] : memref<32x128xf32, #tpu.memory_space<vmem>>, vector<32x128xf32>
    %c0_2 = arith.constant 0 : index
    %c0_3 = arith.constant 0 : index
    %4 = vector.load %arg3[%c0_2, %c0_3] : memref<32x128xf32, #tpu.memory_space<vmem>>, vector<32x128xf32>
    %5 = arith.truncf %4 : vector<32x128xf32> to vector<32x128xbf16>
    %c0_4 = arith.constant 0 : index
    %c0_5 = arith.constant 0 : index
    %6 = vector.load %arg4[%c0_4, %c0_5] : memref<128x128xbf16, #tpu.memory_space<vmem>>, vector<128x128xbf16>
    %cst = arith.constant dense<0.000000e+00> : vector<32x128xf32>
    %7 = tpu.matmul %5, %6, %cst {dimension_numbers = #tpu.dot_dimension_numbers<[1], [0], [0], [1], [0, 0, 1, 1], [], []>} : vector<32x128xbf16>, vector<128x128xbf16>, vector<32x128xf32> -> vector<32x128xf32>
    %8 = arith.addf %3, %7 : vector<32x128xf32>
    %c0_6 = arith.constant 0 : index
    %c0_7 = arith.constant 0 : index
    %9 = vector.load %arg6[%c0_6, %c0_7] : memref<32x128xf32, #tpu.memory_space<vmem>>, vector<32x128xf32>
    tpu.vector_store %arg6[%c0_6, %c0_7], %8 {strides = array<i32>} : memref<32x128xf32, #tpu.memory_space<vmem>>, vector<32x128xf32>,
    %c0_i32_8 = arith.constant 0 : i32
    %10 = arith.cmpi eq, %arg2, %c0_i32_8 : i32
    %11 = arith.extui %10 : i1 to i32
    %c0_i32_9 = arith.constant 0 : i32
    %12 = arith.cmpi ne, %11, %c0_i32_9 : i32
    scf.if %12 {
      %c0_10 = arith.constant 0 : index
      %c0_11 = arith.constant 0 : index
      %13 = vector.load %arg6[%c0_10, %c0_11] : memref<32x128xf32, #tpu.memory_space<vmem>>, vector<32x128xf32>
      %14 = arith.truncf %13 : vector<32x128xf32> to vector<32x128xbf16>
      %c0_12 = arith.constant 0 : index
      %c0_13 = arith.constant 0 : index
      %15 = vector.load %arg5[%c0_12, %c0_13] : memref<32x128xbf16, #tpu.memory_space<vmem>>, vector<32x128xbf16>
      tpu.vector_store %arg5[%c0_12, %c0_13], %14 {strides = array<i32>} : memref<32x128xbf16, #tpu.memory_space<vmem>>, vector<32x128xbf16>,
    } else {
    }
    return
  }
  func.func @transform_0(%arg0: i32, %arg1: i32, %arg2: i32) -> (i32, i32) {
    %c0_i32 = arith.constant 0 : i32
    return %arg0, %arg2 : i32, i32
  }
  func.func @transform_1(%arg0: i32, %arg1: i32, %arg2: i32) -> (i32, i32) {
    %c0_i32 = arith.constant 0 : i32
    return %arg2, %arg1 : i32, i32
  }
  func.func @transform_2(%arg0: i32, %arg1: i32, %arg2: i32) -> (i32, i32) {
    %c0_i32 = arith.constant 0 : i32
    return %arg0, %arg1 : i32, i32
  }
}

</mosaic_0001>

<bundles_post_ra>
// kernel: tpu_custom_call.1
= control target key start
LH: loop header
LB: loop body
LE: loop exit
PB: predicated region body
PF: predicated region fallthrough
CT: control target
= control target key end

     0   :  { %7 = vsyncpa [#allocation4], 0  ;;  %s1048_s0 = inlined_call_operand.hbm [shape: f32[32,128], index: 0, kind: input, shape index: {}]   ;;  %s1049_s1 = inlined_call_operand.hbm [shape: bf16[128,384], index: 1, kind: input, shape index: {}]   ;;  %s1050_s2 = inlined_call_operand.hbm [shape: bf16[32,384], index: 2, kind: output, shape index: {}]  }
   0x1   :  { %8 = vsyncpa [#allocation7], 0 }
   0x2   :  { %10 = vsyncpa [#allocation7 + $0x1], 0 }
   0x3   :  { %11 = vsyncpa [#allocation5], 0 }
   0x4   :  { %13 = vsyncpa [#allocation5 + $0x1], 0  ;;  %s836_s9 = smov 0   ;;  %s838_s10 = smov 0  }
   0x5   :  { %s840_s11 = smov 0   ;;  %s842_s12 = smov 0  }
   0x6   :  { %s844_s13 = smov 0   ;;  %s846_s14 = smov 0  }
   0x7 LB: > { %s503_s15 = sadd.s32 4294967295, %s808_s14   ;;  %s504_s16 = sadd.s32 4294967294, %s808_s14   ;;  %s808_s14 = sphi %s846_s14, %s19_s14   ;;  %s804_s13 = sphi %s844_s13, %s1075_s13   ;;  %s800_s12 = sphi %s842_s12, %s1074_s12   ;;  %s796_s11 = sphi %s840_s11, %s1073_s11   ;;  %s792_s10 = sphi %s838_s10, %s1072_s10   ;;  %s788_s9 = sphi %s836_s9, %s1071_s9  }
   0x8   : > { %p82_p0 = scmp.ne.s32.totalorder %s796_s11, %s792_s10  ;;  %p83_p1 = scmp.eq.s32.totalorder %s808_s14, 0 }
   0x9   : > { %p88_p2 = scmp.ne.s32.totalorder %s792_s10, %s788_s9  ;;  %p873_p3 = scmp.eq.s32.totalorder %s503_s15, 0 }
   0xa   : > { %p877_p4 = por %p83_p1, %p82_p0  ;;  %p114_p5 = scmp.eq.s32.totalorder %s503_s15, 2 }
   0xb   : > { %s1057_s17 = scalar_select %p873_p3, 1, 0 }
   0xc   : > { %p883_p6 = por %p873_p3, %p88_p2  ;;  %p120_p7 = scmp.eq.s32.totalorder %s504_s16, 2 }
   0xd   : > { %p887_p8 = por %p114_p5, %p82_p0  ;;  %p505_p9 = scmp.ge.s32.totalorder %s808_s14, 1 }
   0xe   : > { %s1059_s19 = scalar_select %p883_p6, 1, 0 }
   0xf   : > { %s1060_s20 = scalar_select %p887_p8, 1, 0 }
  0x10   : > { %p892_p10 = por %p120_p7, %p88_p2  ;;  %p127_p11 = scmp.lt.s32.totalorder %s808_s14, 4 }
  0x11   : > { %s810_s23 = smov [#allocation3]   ;;  %p596_p0 = scmp.lt.s32.totalorder %s808_s14, 3 }
  0x12   : > { %s1061_s21 = scalar_select %p892_p10, 1, 0 }
  0x13   : > { %p897_p12 = pnand %p505_p9, %p127_p11  ;;  %s143_s24 = sshll.u32 %s810_s23, 4  ;;  %s144_s24 = int_to_ptr.vmem [resolvable:$true] %s143_s24 }
  0x14   : > { %p912_p2 = pnand %p596_p0, %p877_p4  ;;  %s34_s27 = sadd.s32 1, %s804_s13 }
  0x15   : > { %s1062_s22 = scalar_select %p897_p12, 1, 0 }
  0x16   : > { %p583_p13 = pneg %p897_p12  ;;  %s664_s30 = scalar_lea.hbm %s1048_s0, 512 }
  0x17   : > { %s1064_s26 = scalar_select %p912_p2, 1, 0 }
  0x18   : > { %p906_p1 = pnand %p583_p13, %p873_p3  ;;  %p665_p5 = scmp.ne.s32.totalorder %s1048_s0, %s664_s30 }
  0x19   : > { %p671_p4 = scmp.lt.u32.totalorder %s664_s30, %s1048_s0 }
  0x1a   : > { %p666_p7 = pneg %p906_p1 }
  0x1c   : > { %p667_p9 = pnand %p666_p7, %p665_p5 }
  0x1e   : > { %p668_p11 = pneg %p667_p9 }
  0x20   : > { %p673_p13 = pnand %p671_p4, %p668_p11 }
  0x22   : > { %676 = shalt.err (!%p673_p13)
}
  0x23   : > { %s677_s7 = scalar_lea.vmem %s144_s24, 512  ;;  %p685_p6 = scmp.lt.s32.totalorder %s144_s24, %s144_s24 }
  0x24   : > { %p678_p0 = scmp.ne.s32.totalorder %s144_s24, %s677_s7  ;;  %p686_p3 = scmp.lt.s32.totalorder %s677_s7, %s677_s7 }
  0x26   : > { %p680_p10 = pnand %p678_p0, %p666_p7  ;;  %p687_p12 = por %p686_p3, %p685_p6 }
  0x28   : > { %p681_p8 = pneg %p680_p10 }
  0x2a   : > { %p688_p2 = pnand %p687_p12, %p681_p8 }
  0x2c   : > { %691 = shalt.err (!%p688_p2)
}
  0x2d   : > { %s811_s8 = smov 128   ;;  %s812_s15 = smov 8  }
  0x2e   : > { %586 = dma.hbm_to_vmem [thread:$0]  (!%p906_p1), %s1048_s0, 512, %s144_s24, [#allocation4], %s811_s8, %s811_s8, %s812_s15  }
  0x2f   : > { %p36_p5 = scmp.ge.s32.totalorder %s34_s27, 3  ;;  %s75_s23 = sadd.s32 1, %s796_s11 }
  0x30   : > { %s157_s28 = sand.u32 1, %s796_s11   ;;  %s509_s3 = sshll.u32 %s804_s13, 6 }
  0x31   : > { %s1077_s27 = smov (%p36_p5, %s34_s27), 0  ;;  %s508_s29 = sshll.u32 %s157_s28, 6 }
  0x32   : > { %s71_s30 = ssub.s32 %s804_s13, %s1077_s27  ;;  %s943_s25 = scalar_lea.hbm %s1049_s1, %s509_s3 }
  0x33   : > { %p73_p3 = scmp.eq.s32.totalorder %s71_s30, 0  ;;  %s161_s24 = scalar_lea.vmem [#allocation6], %s508_s29 }
  0x34   : > { %s170_s6 = sshll.u32 %s161_s24, 4  ;;  %s950_s8 = scalar_lea.sflag [#allocation7], %s157_s28  ;;  %s948_s6 = int_to_ptr.vmem [resolvable:$true] %s170_s6 }
  0x35   : > { %s946_s7 = scalar_select %p73_p3, %s796_s11, %s75_s23  }
  0x36   : > { %s692_s15 = scalar_lea.hbm %s943_s25, 1024  ;;  %p1065_p8 = scmp.ne.s32.totalorder %s1064_s26, 0 }
  0x37   : > { %p693_p6 = scmp.ne.s32.totalorder %s943_s25, %s692_s15  ;;  %s697_s30 = scalar_lea.hbm %s1049_s1, 3072 }
  0x38   : > { %p694_p10 = pneg %p1065_p8  ;;  %p698_p2 = scmp.lt.u32.totalorder %s943_s25, %s1049_s1 }
  0x39   : > { %p699_p7 = scmp.lt.u32.totalorder %s697_s30, %s692_s15  ;;  %p701_p11 = scmp.lt.u32.totalorder %s692_s15, %s943_s25 }
  0x3a   : > { %p695_p12 = pnand %p694_p10, %p693_p6 }
  0x3b   : > { %p700_p9 = por %p699_p7, %p698_p2 }
  0x3c   : > { %p696_p1 = pneg %p695_p12 }
  0x3d   : > { %p702_p4 = por %p701_p11, %p700_p9 }
  0x3f   : > { %p703_p13 = pnand %p702_p4, %p696_p1 }
  0x41   : > { %706 = shalt.err (!%p703_p13)
}
  0x42   : > { %s707_s23 = scalar_lea.vmem %s948_s6, 1024  ;;  %s813_s28 = smov [#allocation6]  }
  0x43   : > { %p708_p0 = scmp.ne.s32.totalorder %s948_s6, %s707_s23  ;;  %s712_s4 = sshll.u32 %s813_s28, 4  ;;  %s713_s4 = int_to_ptr.vmem [resolvable:$false] %s712_s4 }
  0x44   : > { %s714_s5 = scalar_lea.vmem %s713_s4, 2048  ;;  %p715_p6 = scmp.lt.s32.totalorder %s948_s6, %s713_s4 }
  0x45   : > { %p710_p5 = pnand %p708_p0, %p694_p10  ;;  %p716_p12 = scmp.lt.s32.totalorder %s714_s5, %s707_s23 }
  0x47   : > { %p711_p3 = pneg %p710_p5  ;;  %p717_p2 = por %p716_p12, %p715_p6 }
  0x49   : > { %p718_p7 = pnand %p717_p2, %p711_p3 }
  0x4b   : > { %721 = shalt.err (!%p718_p7)
}
  0x4c   : > { %s814_s24 = smov 192   ;;  %s815_s15 = smov 64  }
  0x4d   : > { %s816_s16 = smov 4   ;;  %p1066_p10 = scmp.ne.s32.totalorder %s1062_s22, 0 }
  0x4e   : > { %590 = dma.hbm_to_vmem [thread:$0]  (!%p1065_p8), %s943_s25, 1024, %s948_s6, %s950_s8, %s814_s24, %s815_s15, %s816_s16  }
  0x4f   : > { %182 = sbr.rel (%p1066_p10) target bundleno = 357 (0x165), region = 28  ;;  %p1067_p1 = scmp.ne.s32.totalorder (!%p1066_p10), %s1057_s17, 0 }
  0x56   : > { %775 = dma.done.wait (%p1067_p1), [#allocation4], 512  }
  0x57   : > { %777 = vsyncadd (%p1067_p1), [#allocation4], 4294966784  ;;  %s985_s18 = sand.u32 1, %s792_s10   ;;  %p1068_p9 = scmp.ne.s32.totalorder %s1059_s19, 0 }
  0x58   : > { %s512_s30 = sshll.u32 %s985_s18, 6  ;;  %s189_s29 = scalar_lea.sflag [#allocation7], %s985_s18 }
  0x59   : > { %s192_s3 = scalar_lea.vmem [#allocation6], %s512_s30 }
  0x5a   : > { %779 = dma.done.wait (%p1068_p9), %s189_s29, 1024  }
  0x5b   : > { %781 = vsyncadd (%p1068_p9), %s189_s29, 4294966272  ;;  %v656_v0 = vld [vmem:[%s192_s3] sm:$0xff]   ;;  %v657_v1 = vld [vmem:[%s192_s3 + $0x8] sm:$0xff]   ;;  %s513_s17 = sshll.u32 %s985_s18, 4  ;;  %s527_s26 = sshll.u32 %s800_s12, 6 }
  0x5c   : > { %555 = vmatprep.subr.bf16.mxu0 %v656_v0  ;;  %v658_v2 = vld [vmem:[%s192_s3 + $0x10] sm:$0xff]   ;;  %v659_v3 = vld [vmem:[%s192_s3 + $0x18] sm:$0xff]   ;;  %v229_v4 = vld [vmem:[#allocation3] sm:$0xff]  ;;  %s212_s19 = scalar_lea.vmem [#allocation8], %s513_s17  ;;  %s1000_s8 = scalar_lea.hbm %s1050_s2, %s527_s26 }
  0x5d   : > { %556 = vmatpush3.bf16.msra.mxu0 %v656_v0  ;;  %v230_v5 = vld [vmem:[#allocation3 + $0x8] sm:$0xff]  ;;  %v660_v7 = vld [vmem:[%s192_s3 + $0x20] sm:$0xff]   ;;  %v662_v9 = vld [vmem:[%s192_s3 + $0x30] sm:$0xff]   ;;  %s399_s22 = sshll.u32 %s212_s19, 4  ;;  %s384_s23 = scalar_lea.sflag [#allocation5], %s985_s18  ;;  %s995_s22 = int_to_ptr.vmem [resolvable:$true] %s399_s22 }
  0x5e   : > { %557 = vmatprep.subr.bf16.mxu0 %v657_v1  ;;  %v233_v6 = vpack.c.bf16 %v230_v5, %v229_v4  ;;  %v661_v8 = vld [vmem:[%s192_s3 + $0x28] sm:$0xff]   ;;  %v663_v10 = vld [vmem:[%s192_s3 + $0x38] sm:$0xff]   ;;  %v231_v11 = vld [vmem:[#allocation3 + $0x10] sm:$0xff]  ;;  %s722_s28 = scalar_lea.vmem %s995_s22, 256  ;;  %p1069_p11 = scmp.ne.s32.totalorder %s1060_s20, 0 }
  0x5f   : > { %v232_v12 = vld [vmem:[#allocation3 + $0x18] sm:$0xff]  ;;  %p723_p8 = scmp.ne.s32.totalorder %s995_s22, %s722_s28  ;;  %s817_s12 = smov [#allocation8]  }
  0x60   : > { %571 = vmatprep.mubr.bf16.mxu0 %v233_v6  ;;  %v234_v13 = vpack.c.bf16 %v232_v12, %v231_v11  ;;  %s726_s4 = sshll.u32 %s817_s12, 4  ;;  %s727_s4 = int_to_ptr.vmem [resolvable:$false] %s726_s4 }
  0x61   : > { %558 = vmatpush3.bf16.msra.mxu0 %v657_v1  ;;  %p724_p4 = pnand %p723_p8, %p1069_p11  ;;  %s728_s5 = scalar_lea.vmem %s727_s4, 512 }
  0x62   : > { %559 = vmatprep.subr.bf16.mxu0 %v658_v2  ;;  %p729_p0 = scmp.lt.s32.totalorder %s995_s22, %s727_s4  ;;  %p730_p5 = scmp.lt.s32.totalorder %s728_s5, %s722_s28 }
  0x63   : > { %p725_p13 = pneg %p724_p4 }
  0x64   : > { %p731_p3 = por %p730_p5, %p729_p0 }
  0x65   : > { %560 = vmatpush3.bf16.msra.mxu0 %v658_v2 }
  0x66   : > { %561 = vmatprep.subr.bf16.mxu0 %v659_v3  ;;  %p732_p6 = pnand %p731_p3, %p725_p13 }
  0x69   : > { %562 = vmatpush3.bf16.msra.mxu0 %v659_v3 }
  0x6a   : > { %563 = vmatprep.subr.bf16.mxu0 %v660_v7 }
  0x6d   : > { %564 = vmatpush3.bf16.msra.mxu0 %v660_v7 }
  0x6e   : > { %565 = vmatprep.subr.bf16.mxu0 %v661_v8 }
  0x71   : > { %566 = vmatpush3.bf16.msra.mxu0 %v661_v8 }
  0x72   : > { %567 = vmatprep.subr.bf16.mxu0 %v662_v9 }
  0x75   : > { %568 = vmatpush3.bf16.msra.mxu0 %v662_v9 }
  0x76   : > { %569 = vmatprep.subr.bf16.mxu0 %v663_v10 }
  0x79   : > { %570 = vmatpush3.bf16.msra.mxu0 %v663_v10 }
  0x7c   : > { %572 = vmatmul.mubr.bf16.vlgmr.msra.gmra.mrb[0].mxu0 %v234_v13 }
 0x14f   : > { %v573_v14 = vpop.f32.mrb[0].mxu0 }
 0x150   : > { %v333_v15 = vpop.f32.mrb[1].mxu0 }
 0x151   : > { %v574_v16 = vpop.f32.mrb[2].mxu0 }
 0x152   : > { %v542_v17 = vpack.c.bf16 %v574_v16, %v573_v14  ;;  %v336_v18 = vpop.f32.mrb[3].mxu0 }
 0x153   : > { %v537_v19 = vpack.c.bf16 %v336_v18, %v333_v15 }
 0x154   : > { %544 = vst [vmem:[%s212_s19 + $0x8] sm:$0xff] %v542_v17  }
 0x155   : > { %538 = vst [vmem:[%s212_s19] sm:$0xff] %v537_v19  }
 0x156   : > { %735 = shalt.err (!%p732_p6)
}
 0x157   : > { %s736_s24 = scalar_lea.hbm %s1000_s8, 256  ;;  %s740_s30 = scalar_lea.hbm %s1050_s2, 768 }
 0x158   : > { %p737_p12 = scmp.ne.s32.totalorder %s1000_s8, %s736_s24  ;;  %p741_p10 = scmp.lt.u32.totalorder %s1000_s8, %s1050_s2 }
 0x159   : > { %p742_p1 = scmp.lt.u32.totalorder %s740_s30, %s736_s24  ;;  %p744_p8 = scmp.lt.u32.totalorder %s736_s24, %s1000_s8 }
 0x15a   : > { %p738_p2 = pnand %p737_p12, %p1069_p11 }
 0x15b   : > { %p743_p9 = por %p742_p1, %p741_p10 }
 0x15c   : > { %p739_p7 = pneg %p738_p2 }
 0x15d   : > { %p745_p4 = por %p744_p8, %p743_p9 }
 0x15f   : > { %p746_p13 = pnand %p745_p4, %p739_p7 }
 0x161   : > { %749 = shalt.err (!%p746_p13)
}
 0x162   : > { %s818_s17 = smov 64   ;;  %s819_s19 = smov 192  }
 0x163   : > { %s820_s26 = smov 4  }
 0x164   : > { %581 = dma.vmem_to_hbm [thread:$0]  (%p1069_p11), %s995_s22, 256, %s1000_s8, %s384_s23, %s818_s17, %s819_s19, %s820_s26  }
 0x165 PF: > { %p598_p0 = scmp.ge.s32.totalorder %s808_s14, 2  ;;  %s414_s25 = sand.u32 1, %s788_s9  }
 0x166   : > { %p1070_p5 = scmp.ne.s32.totalorder %s1061_s21, 0  ;;  %s415_s6 = scalar_lea.sflag [#allocation5], %s414_s25 }
 0x168   : > { %p592_p3 = pnand %p598_p0, %p1070_p5 }
 0x16a   : > { %783 = dma.done.wait (!%p592_p3), %s415_s6, 256  }
 0x16b   : > { %785 = vsyncadd (!%p592_p3), %s415_s6, 4294967040  ;;  %s19_s14 = sadd.s32 1, %s808_s14   ;;  %s1071_s9 = smov %s792_s10 }
 0x16c   : > { %p16_p6 = scmp.ge.s32.totalorder %s19_s14, 5   ;;  %s1072_s10 = smov %s796_s11 }
 0x16d   : > { %s1073_s11 = smov %s946_s7  ;;  %s1074_s12 = smov %s804_s13 }
 0x16e   : > { %s1075_s13 = smov %s1077_s27  ;;  %18 = sbr.rel (!%p16_p6) target bundleno = 7 (0x7), region = 87 }
 0x175   :  { %420 = vsyncpa [#allocation4], 1 }
 0x176   :  { %422 = vsyncpa [#allocation4 + $0x1], 1 }
 0x177   :  { %423 = vsyncpa [#allocation7], 1 }
 0x178   :  { %425 = vsyncpa [#allocation7 + $0x1], 1 }
 0x179   :  { %426 = vsyncpa [#allocation5], 1 }
 0x17a   :  { %428 = vsyncpa [#allocation5 + $0x1], 1 }

</bundles_post_ra>
